<compile_context>
chip_gen: v7x
topology: tpu7x:2x2x1
jax: 0.10.0
libtpu: 0.0.40
codegen_flags: <defaults>
</compile_context>

<pallas_src>
import jax
import jax.numpy as jnp
from jax.experimental import pallas as pl
from jax.experimental.pallas import tpu as pltpu


def _critic_kernel(obs_ref, act_ref, w1o_ref, w1a_ref, b1_ref, w2_ref, b2_ref,
                   w3t_ref, b3_ref, out_ref):
    """Single invocation: the whole E-member ensemble forward in one body."""
    obs = obs_ref[...]                       # (B, OBS_DIM)
    act = act_ref[...]                       # (B, ACT_DIM)
    E = out_ref.shape[0]

    qs = []
    for e in range(E):                       # static unroll over ensemble
        # Layer 1: split matmul replaces cat(obs, action) @ W1[e].
        h1 = jnp.dot(obs, w1o_ref[e], preferred_element_type=jnp.float32)
        h1 = h1 + jnp.dot(act, w1a_ref[e], preferred_element_type=jnp.float32)
        h1 = jnp.maximum(h1 + b1_ref[pl.ds(e, 1), :], 0.0)      # (B, H)
        # Layer 2.
        h2 = jnp.dot(h1, w2_ref[e], preferred_element_type=jnp.float32)
        h2 = jnp.maximum(h2 + b2_ref[pl.ds(e, 1), :], 0.0)      # (B, H)
        # Output layer (out_dim == 1): lane-wise reduction instead of a
        # degenerate (H, 1) matmul; bias read as an SMEM scalar.
        q = jnp.sum(h2 * w3t_ref[pl.ds(e, 1), :], axis=-1) + b3_ref[e]  # (B,)
        qs.append(q)

    out_ref[...] = jnp.stack(qs, axis=0)     # one (E, B) full-block store


def prepare_params(params, obs_dim):
    """One-time parameter layout prep (hoisted out of the per-call hot path)."""
    w1, b1, w2, b2, w3, b3 = params
    E, D, H = w1.shape
    f32 = jnp.float32
    w1_obs = w1[:, :obs_dim, :].astype(f32)     # (E, OBS_DIM, H)
    w1_act = w1[:, obs_dim:, :].astype(f32)     # (E, ACT_DIM, H)
    b1_2d = b1.reshape(E, H).astype(f32)        # (E, H)
    w2_f = w2.astype(f32)                       # (E, H, H)
    b2_2d = b2.reshape(E, H).astype(f32)        # (E, H)
    w3t = w3.reshape(E, H).astype(f32)          # (E, H) = W3[..., 0]
    b3_1d = b3.reshape(E).astype(f32)           # (E,)
    return w1_obs, w1_act, b1_2d, w2_f, b2_2d, w3t, b3_1d


def continuous_mlp_critic(obs, action, prepared):
    """Pallas forward of ContinuousMLPCritic (ensemble of E Q functions)."""
    w1o, w1a, b1, w2, b2, w3t, b3 = prepared
    E = w1o.shape[0]
    B = obs.shape[0]

    vmem = lambda: pl.BlockSpec(memory_space=pltpu.MemorySpace.VMEM)
    smem = lambda: pl.BlockSpec(memory_space=pltpu.MemorySpace.SMEM)

    out = pl.pallas_call(
        _critic_kernel,
        out_shape=jax.ShapeDtypeStruct((E, B), jnp.float32),
        in_specs=[vmem(),  # obs
                  vmem(),  # action
                  vmem(),  # W1[:, :obs_dim, :]
                  vmem(),  # W1[:, obs_dim:, :]
                  vmem(),  # b1
                  vmem(),  # W2
                  vmem(),  # b2
                  vmem(),  # W3^T rows
                  smem()], # b3 scalars
        out_specs=vmem(),
    )(obs.astype(jnp.float32), action.astype(jnp.float32),
      w1o, w1a, b1, w2, b2, w3t, b3)
    return out  # (E, B)


def init_params(key, ensemble_size, in_dim, hidden, out_dim=1):
    """Deterministic synthetic init (stand-in for LinearEnsemble params)."""
    k1, k2, k3 = jax.random.split(key, 3)
    scale1 = 1.0 / jnp.sqrt(in_dim)
    scale2 = 1.0 / jnp.sqrt(hidden)
    w1 = jax.random.normal(k1, (ensemble_size, in_dim, hidden), jnp.float32) * scale1
    b1 = jnp.zeros((ensemble_size, hidden), jnp.float32)
    w2 = jax.random.normal(k2, (ensemble_size, hidden, hidden), jnp.float32) * scale2
    b2 = jnp.zeros((ensemble_size, hidden), jnp.float32)
    w3 = jax.random.normal(k3, (ensemble_size, hidden, out_dim), jnp.float32) * scale2
    b3 = jnp.zeros((ensemble_size, out_dim), jnp.float32)
    return w1, b1, w2, b2, w3, b3


def reference_forward(obs, action, params):
    """Pure-JAX reference mirroring the torch EnsembleMLP forward."""
    w1, b1, w2, b2, w3, b3 = params
    x = jnp.concatenate([obs, action], axis=-1)               # (B, D)
    xe = jnp.broadcast_to(x[None], (w1.shape[0],) + x.shape)  # (E, B, D)
    h = jax.nn.relu(jnp.einsum('ebd,edh->ebh', xe, w1) + b1[:, None, :])
    h = jax.nn.relu(jnp.einsum('ebh,ehk->ebk', h, w2) + b2[:, None, :])
    q = jnp.einsum('ebh,eho->ebo', h, w3) + b3[:, None, :]    # (E, B, 1)
    return q[..., 0]                                          # (E, B)


if __name__ == "__main__":
    # Small shapes consistent with the module: obs_dim + act_dim = in_dim,
    # hidden_layers=[32, 32], num_q_fns (ensemble) = 2, batch = 8.
    # TODO(synk): ln=True / dropout options of MLP/EnsembleMLP are not
    # implemented (defaults in the spec are ln=False, dropout=None).
    E = 2          # num_q_fns
    OBS_DIM = 24
    ACT_DIM = 8
    HIDDEN = 32
    B = 8

    key = jax.random.PRNGKey(0)
    k_obs, k_act, k_par = jax.random.split(key, 3)
    obs = jax.random.normal(k_obs, (B, OBS_DIM), jnp.float32)
    action = jax.random.normal(k_act, (B, ACT_DIM), jnp.float32)
    raw_params = init_params(k_par, E, OBS_DIM + ACT_DIM, HIDDEN)

    prepared = prepare_params(raw_params, OBS_DIM)   # one-time layout prep
    q = continuous_mlp_critic(obs, action, prepared)
    q = jax.block_until_ready(q)

    q_ref = reference_forward(obs, action, raw_params)
    assert q.shape == (E, B), q.shape
    assert jnp.allclose(q, q_ref, atol=1e-4, rtol=1e-4), (
        f"mismatch: max abs err {jnp.max(jnp.abs(q - q_ref))}")

    print("KERNEL_OK")
</pallas_src>

<mosaic_0001>
module attributes {stable_mosaic.version = 11 : i64} {
  func.func @_critic_kernel(%arg0: memref<8x24xf32, #tpu.memory_space<vmem>>, %arg1: memref<8x8xf32, #tpu.memory_space<vmem>>, %arg2: memref<2x24x32xf32, #tpu.memory_space<vmem>>, %arg3: memref<2x8x32xf32, #tpu.memory_space<vmem>>, %arg4: memref<2x32xf32, #tpu.memory_space<vmem>>, %arg5: memref<2x32x32xf32, #tpu.memory_space<vmem>>, %arg6: memref<2x32xf32, #tpu.memory_space<vmem>>, %arg7: memref<2x32xf32, #tpu.memory_space<vmem>>, %arg8: memref<2xf32, #tpu.memory_space<smem>>, %arg9: memref<2x8xf32, #tpu.memory_space<vmem>>) attributes {dimension_semantics = [], scalar_prefetch = 0 : i64, scratch_operands = 0 : i64, tpu.core_type = #tpu.core_type<tc>} {
    %c0 = arith.constant 0 : index
    %c0_0 = arith.constant 0 : index
    %0 = vector.load %arg0[%c0, %c0_0] : memref<8x24xf32, #tpu.memory_space<vmem>>, vector<8x24xf32>
    %c0_1 = arith.constant 0 : index
    %c0_2 = arith.constant 0 : index
    %1 = vector.load %arg1[%c0_1, %c0_2] : memref<8x8xf32, #tpu.memory_space<vmem>>, vector<8x8xf32>
    %c0_3 = arith.constant 0 : index
    %c0_4 = arith.constant 0 : index
    %c0_5 = arith.constant 0 : index
    %2 = vector.load %arg2[%c0_3, %c0_4, %c0_5] : memref<2x24x32xf32, #tpu.memory_space<vmem>>, vector<1x24x32xf32>
    %3 = vector.shape_cast %2 : vector<1x24x32xf32> to vector<24x32xf32>
    %cst = arith.constant dense<0.000000e+00> : vector<8x32xf32>
    %4 = tpu.matmul %0, %3, %cst {dimension_numbers = #tpu.dot_dimension_numbers<[1], [0], [0], [1], [0, 0, 1, 1], [], []>} : vector<8x24xf32>, vector<24x32xf32>, vector<8x32xf32> -> vector<8x32xf32>
    %c0_6 = arith.constant 0 : index
    %c0_7 = arith.constant 0 : index
    %c0_8 = arith.constant 0 : index
    %5 = vector.load %arg3[%c0_6, %c0_7, %c0_8] : memref<2x8x32xf32, #tpu.memory_space<vmem>>, vector<1x8x32xf32>
    %6 = vector.shape_cast %5 : vector<1x8x32xf32> to vector<8x32xf32>
    %cst_9 = arith.constant dense<0.000000e+00> : vector<8x32xf32>
    %7 = tpu.matmul %1, %6, %cst_9 {dimension_numbers = #tpu.dot_dimension_numbers<[1], [0], [0], [1], [0, 0, 1, 1], [], []>} : vector<8x8xf32>, vector<8x32xf32>, vector<8x32xf32> -> vector<8x32xf32>
    %8 = arith.addf %4, %7 : vector<8x32xf32>
    %c0_10 = arith.constant 0 : index
    %c0_11 = arith.constant 0 : index
    %9 = vector.load %arg4[%c0_10, %c0_11] : memref<2x32xf32, #tpu.memory_space<vmem>>, vector<1x32xf32>
    %10 = vector.broadcast %9 : vector<1x32xf32> to vector<8x32xf32>
    %11 = arith.addf %8, %10 : vector<8x32xf32>
    %cst_12 = arith.constant 0.000000e+00 : f32
    %12 = vector.broadcast %cst_12 : f32 to vector<8x32xf32>
    %13 = arith.maximumf %11, %12 : vector<8x32xf32>
    %c0_13 = arith.constant 0 : index
    %c0_14 = arith.constant 0 : index
    %c0_15 = arith.constant 0 : index
    %14 = vector.load %arg5[%c0_13, %c0_14, %c0_15] : memref<2x32x32xf32, #tpu.memory_space<vmem>>, vector<1x32x32xf32>
    %15 = vector.shape_cast %14 : vector<1x32x32xf32> to vector<32x32xf32>
    %cst_16 = arith.constant dense<0.000000e+00> : vector<8x32xf32>
    %16 = tpu.matmul %13, %15, %cst_16 {dimension_numbers = #tpu.dot_dimension_numbers<[1], [0], [0], [1], [0, 0, 1, 1], [], []>} : vector<8x32xf32>, vector<32x32xf32>, vector<8x32xf32> -> vector<8x32xf32>
    %c0_17 = arith.constant 0 : index
    %c0_18 = arith.constant 0 : index
    %17 = vector.load %arg6[%c0_17, %c0_18] : memref<2x32xf32, #tpu.memory_space<vmem>>, vector<1x32xf32>
    %18 = vector.broadcast %17 : vector<1x32xf32> to vector<8x32xf32>
    %19 = arith.addf %16, %18 : vector<8x32xf32>
    %cst_19 = arith.constant 0.000000e+00 : f32
    %20 = vector.broadcast %cst_19 : f32 to vector<8x32xf32>
    %21 = arith.maximumf %19, %20 : vector<8x32xf32>
    %c0_20 = arith.constant 0 : index
    %c0_21 = arith.constant 0 : index
    %22 = vector.load %arg7[%c0_20, %c0_21] : memref<2x32xf32, #tpu.memory_space<vmem>>, vector<1x32xf32>
    %23 = vector.broadcast %22 : vector<1x32xf32> to vector<8x32xf32>
    %24 = arith.mulf %21, %23 : vector<8x32xf32>
    %cst_22 = arith.constant dense<0.000000e+00> : vector<8xf32>
    %25 = vector.multi_reduction <add>, %24, %cst_22 [1] : vector<8x32xf32> to vector<8xf32>
    %c0_23 = arith.constant 0 : index
    %26 = memref.load %arg8[%c0_23] : memref<2xf32, #tpu.memory_space<smem>>
    %27 = vector.broadcast %26 : f32 to vector<8xf32>
    %28 = arith.addf %25, %27 : vector<8xf32>
    %c1 = arith.constant 1 : index
    %c0_24 = arith.constant 0 : index
    %c0_25 = arith.constant 0 : index
    %29 = vector.load %arg2[%c1, %c0_24, %c0_25] : memref<2x24x32xf32, #tpu.memory_space<vmem>>, vector<1x24x32xf32>
    %30 = vector.shape_cast %29 : vector<1x24x32xf32> to vector<24x32xf32>
    %cst_26 = arith.constant dense<0.000000e+00> : vector<8x32xf32>
    %31 = tpu.matmul %0, %30, %cst_26 {dimension_numbers = #tpu.dot_dimension_numbers<[1], [0], [0], [1], [0, 0, 1, 1], [], []>} : vector<8x24xf32>, vector<24x32xf32>, vector<8x32xf32> -> vector<8x32xf32>
    %c1_27 = arith.constant 1 : index
    %c0_28 = arith.constant 0 : index
    %c0_29 = arith.constant 0 : index
    %32 = vector.load %arg3[%c1_27, %c0_28, %c0_29] : memref<2x8x32xf32, #tpu.memory_space<vmem>>, vector<1x8x32xf32>
    %33 = vector.shape_cast %32 : vector<1x8x32xf32> to vector<8x32xf32>
    %cst_30 = arith.constant dense<0.000000e+00> : vector<8x32xf32>
    %34 = tpu.matmul %1, %33, %cst_30 {dimension_numbers = #tpu.dot_dimension_numbers<[1], [0], [0], [1], [0, 0, 1, 1], [], []>} : vector<8x8xf32>, vector<8x32xf32>, vector<8x32xf32> -> vector<8x32xf32>
    %35 = arith.addf %31, %34 : vector<8x32xf32>
    %c1_31 = arith.constant 1 : index
    %c0_32 = arith.constant 0 : index
    %36 = vector.load %arg4[%c1_31, %c0_32] : memref<2x32xf32, #tpu.memory_space<vmem>>, vector<1x32xf32>
    %37 = vector.broadcast %36 : vector<1x32xf32> to vector<8x32xf32>
    %38 = arith.addf %35, %37 : vector<8x32xf32>
    %cst_33 = arith.constant 0.000000e+00 : f32
    %39 = vector.broadcast %cst_33 : f32 to vector<8x32xf32>
    %40 = arith.maximumf %38, %39 : vector<8x32xf32>
    %c1_34 = arith.constant 1 : index
    %c0_35 = arith.constant 0 : index
    %c0_36 = arith.constant 0 : index
    %41 = vector.load %arg5[%c1_34, %c0_35, %c0_36] : memref<2x32x32xf32, #tpu.memory_space<vmem>>, vector<1x32x32xf32>
    %42 = vector.shape_cast %41 : vector<1x32x32xf32> to vector<32x32xf32>
    %cst_37 = arith.constant dense<0.000000e+00> : vector<8x32xf32>
    %43 = tpu.matmul %40, %42, %cst_37 {dimension_numbers = #tpu.dot_dimension_numbers<[1], [0], [0], [1], [0, 0, 1, 1], [], []>} : vector<8x32xf32>, vector<32x32xf32>, vector<8x32xf32> -> vector<8x32xf32>
    %c1_38 = arith.constant 1 : index
    %c0_39 = arith.constant 0 : index
    %44 = vector.load %arg6[%c1_38, %c0_39] : memref<2x32xf32, #tpu.memory_space<vmem>>, vector<1x32xf32>
    %45 = vector.broadcast %44 : vector<1x32xf32> to vector<8x32xf32>
    %46 = arith.addf %43, %45 : vector<8x32xf32>
    %cst_40 = arith.constant 0.000000e+00 : f32
    %47 = vector.broadcast %cst_40 : f32 to vector<8x32xf32>
    %48 = arith.maximumf %46, %47 : vector<8x32xf32>
    %c1_41 = arith.constant 1 : index
    %c0_42 = arith.constant 0 : index
    %49 = vector.load %arg7[%c1_41, %c0_42] : memref<2x32xf32, #tpu.memory_space<vmem>>, vector<1x32xf32>
    %50 = vector.broadcast %49 : vector<1x32xf32> to vector<8x32xf32>
    %51 = arith.mulf %48, %50 : vector<8x32xf32>
    %cst_43 = arith.constant dense<0.000000e+00> : vector<8xf32>
    %52 = vector.multi_reduction <add>, %51, %cst_43 [1] : vector<8x32xf32> to vector<8xf32>
    %c1_44 = arith.constant 1 : index
    %53 = memref.load %arg8[%c1_44] : memref<2xf32, #tpu.memory_space<smem>>
    %54 = vector.broadcast %53 : f32 to vector<8xf32>
    %55 = arith.addf %52, %54 : vector<8xf32>
    %56 = vector.shape_cast %28 : vector<8xf32> to vector<1x8xf32>
    %57 = vector.shape_cast %55 : vector<8xf32> to vector<1x8xf32>
    %58 = tpu.concatenate %56, %57 in 0 : vector<1x8xf32>, vector<1x8xf32> -> vector<2x8xf32>
    %c0_45 = arith.constant 0 : index
    %c0_46 = arith.constant 0 : index
    %59 = vector.load %arg9[%c0_45, %c0_46] : memref<2x8xf32, #tpu.memory_space<vmem>>, vector<2x8xf32>
    tpu.vector_store %arg9[%c0_45, %c0_46], %58 {strides = array<i32>} : memref<2x8xf32, #tpu.memory_space<vmem>>, vector<2x8xf32>,
    return
  }
}

</mosaic_0001>

<bundles_post_ra>
// kernel: tpu_custom_call.1
= control target key start
LH: loop header
LB: loop body
LE: loop exit
PB: predicated region body
PF: predicated region fallthrough
CT: control target
= control target key end

     0   :  { %14 = vsyncpa [#allocation3], 0  ;;  %s1099_s0 = inlined_call_operand.hbm [shape: f32[8,24], index: 0, kind: input, shape index: {}]   ;;  %s1100_s1 = inlined_call_operand.hbm [shape: f32[8,8], index: 1, kind: input, shape index: {}]   ;;  %s1101_s2 = inlined_call_operand.hbm [shape: f32[2,24,32], index: 2, kind: input, shape index: {}]   ;;  %s1102_s3 = inlined_call_operand.hbm [shape: f32[2,8,32], index: 3, kind: input, shape index: {}]   ;;  %s1103_s4 = inlined_call_operand.vmem [shape: f32[2,32], index: 4, kind: input, shape index: {}]   ;;  %s1104_s5 = inlined_call_operand.hbm [shape: f32[2,32,32], index: 5, kind: input, shape index: {}]   ;;  %s1105_s6 = inlined_call_operand.vmem [shape: f32[2,32], index: 6, kind: input, shape index: {}]   ;;  %s1106_s7 = inlined_call_operand.vmem [shape: f32[2,32], index: 7, kind: input, shape index: {}]   ;;  %s1107_s8 = inlined_call_operand.vmem [shape: f32[2], index: 8, kind: input, shape index: {}]   ;;  %s1108_s9 = inlined_call_operand.hbm [shape: f32[2,8], index: 9, kind: output, shape index: {}]  }
   0x1   :  { %15 = vsyncpa [#allocation7], 0 }
   0x2   :  { %16 = vsyncpa [#allocation10], 0 }
   0x3   :  { %17 = vsyncpa [#allocation5], 0 }
   0x4   :  { %18 = vsyncpa [#allocation4], 0  ;;  %s921_s30 = smov [#allocation6]   ;;  %s767_s13 = scalar_lea.hbm %s1100_s1, 128 }
   0x5   :  { %s35_s10 = sshll.u32 %s921_s30, 4  ;;  %p768_p0 = scmp.ne.s32.totalorder %s1100_s1, %s767_s13  ;;  %s36_s10 = int_to_ptr.vmem [resolvable:$true] %s35_s10 }
   0x6   :  { %p771_p1 = scmp.lt.u32.totalorder %s767_s13, %s1100_s1 }
   0x8   :  { %p773_p2 = pnand %p771_p1, %p768_p0 }
   0xa   :  { %776 = shalt.err (!%p773_p2)
}
   0xb   :  { %s777_s18 = scalar_lea.vmem %s36_s10, 128  ;;  %p782_p4 = scmp.lt.s32.totalorder %s36_s10, %s36_s10 }
   0xc   :  { %p778_p3 = scmp.ne.s32.totalorder %s36_s10, %s777_s18  ;;  %p783_p5 = scmp.lt.s32.totalorder %s777_s18, %s777_s18 }
   0xe   :  { %p784_p6 = por %p783_p5, %p782_p4 }
  0x10   :  { %p785_p7 = pnand %p784_p6, %p778_p3 }
  0x12   :  { %788 = shalt.err (!%p785_p7)
}
  0x13   :  { %38 = dma.hbm_to_vmem [thread:$0]  %s1100_s1, 128, %s36_s10, [#allocation7]  }
  0x14   :  { %s922_s21 = smov [#allocation9]   ;;  %s923_s23 = smov [#allocation2]  }
  0x15   :  { %s56_s22 = sshll.u32 %s922_s21, 4  ;;  %s25_s24 = sshll.u32 %s923_s23, 4  ;;  %s57_s22 = int_to_ptr.vmem [resolvable:$true] %s56_s22  ;;  %s26_s24 = int_to_ptr.vmem [resolvable:$true] %s25_s24 }
  0x16   :  { %s789_s27 = scalar_lea.hbm %s1102_s3, 256 }
  0x17   :  { %p790_p8 = scmp.ne.s32.totalorder %s1102_s3, %s789_s27  ;;  %p793_p9 = scmp.lt.u32.totalorder %s789_s27, %s1102_s3 }
  0x19   :  { %p795_p10 = pnand %p793_p9, %p790_p8 }
  0x1b   :  { %798 = shalt.err (!%p795_p10)
}
  0x1c   :  { %s799_s1 = scalar_lea.vmem %s57_s22, 256  ;;  %p804_p12 = scmp.lt.s32.totalorder %s57_s22, %s57_s22 }
  0x1d   :  { %p800_p11 = scmp.ne.s32.totalorder %s57_s22, %s799_s1  ;;  %p805_p13 = scmp.lt.s32.totalorder %s799_s1, %s799_s1 }
  0x1f   :  { %p806_p0 = por %p805_p13, %p804_p12 }
  0x21   :  { %p807_p1 = pnand %p806_p0, %p800_p11 }
  0x23   :  { %810 = shalt.err (!%p807_p1)
}
  0x24   :  { %s924_s10 = smov 128   ;;  %s925_s12 = smov 8  }
  0x25   :  { %62 = dma.hbm_to_vmem [thread:$0]  %s1102_s3, 256, %s57_s22, [#allocation10], %s924_s10, %s924_s10, %s925_s12  }
  0x26   :  { %s811_s17 = scalar_lea.hbm %s1099_s0, 128 }
  0x27   :  { %p812_p2 = scmp.ne.s32.totalorder %s1099_s0, %s811_s17  ;;  %p815_p3 = scmp.lt.u32.totalorder %s811_s17, %s1099_s0 }
  0x29   :  { %p817_p4 = pnand %p815_p3, %p812_p2 }
  0x2b   :  { %820 = shalt.err (!%p817_p4)
}
  0x2c   :  { %s821_s23 = scalar_lea.vmem %s26_s24, 128  ;;  %p826_p6 = scmp.lt.s32.totalorder %s26_s24, %s26_s24 }
  0x2d   :  { %p822_p5 = scmp.ne.s32.totalorder %s26_s24, %s821_s23  ;;  %p827_p7 = scmp.lt.s32.totalorder %s821_s23, %s821_s23 }
  0x2f   :  { %p828_p8 = por %p827_p7, %p826_p6 }
  0x31   :  { %p829_p9 = pnand %p828_p8, %p822_p5 }
  0x33   :  { %832 = shalt.err (!%p829_p9)
}
  0x34   :  { %28 = dma.hbm_to_vmem [thread:$0]  %s1099_s0, 128, %s26_s24, [#allocation3]  }
  0x35   :  { %s926_s25 = smov [#allocation8]   ;;  %s927_s27 = smov [#allocation11]  }
  0x36   :  { %s44_s26 = sshll.u32 %s926_s25, 4  ;;  %s70_s28 = sshll.u32 %s927_s27, 4  ;;  %s45_s26 = int_to_ptr.vmem [resolvable:$true] %s44_s26  ;;  %s71_s28 = int_to_ptr.vmem [resolvable:$true] %s70_s28 }
  0x37   :  { %s833_s11 = scalar_lea.hbm %s1101_s2, 768 }
  0x38   :  { %p834_p10 = scmp.ne.s32.totalorder %s1101_s2, %s833_s11  ;;  %p837_p11 = scmp.lt.u32.totalorder %s833_s11, %s1101_s2 }
  0x3a   :  { %p839_p12 = pnand %p837_p11, %p834_p10 }
  0x3c   :  { %842 = shalt.err (!%p839_p12)
}
  0x3d   :  { %s843_s0 = scalar_lea.vmem %s45_s26, 768  ;;  %p848_p0 = scmp.lt.s32.totalorder %s45_s26, %s45_s26 }
  0x3e   :  { %p844_p13 = scmp.ne.s32.totalorder %s45_s26, %s843_s0  ;;  %p849_p1 = scmp.lt.s32.totalorder %s843_s0, %s843_s0 }
  0x40   :  { %p850_p2 = por %p849_p1, %p848_p0 }
  0x42   :  { %p851_p3 = pnand %p850_p2, %p844_p13 }
  0x44   :  { %854 = shalt.err (!%p851_p3)
}
  0x45   :  { %50 = dma.hbm_to_vmem [thread:$0]  %s1101_s2, 768, %s45_s26, [#allocation7], %s924_s10, %s924_s10, %s925_s12  }
  0x46   :  { %s87_s19 = sshll.u32 %s1107_s8, 4  ;;  %s855_s23 = scalar_lea.hbm %s1104_s5, 1024  ;;  %s88_s19 = int_to_ptr.vmem [resolvable:$true] %s87_s19 }
  0x47   :  { %p856_p4 = scmp.ne.s32.totalorder %s1104_s5, %s855_s23  ;;  %p859_p5 = scmp.lt.u32.totalorder %s855_s23, %s1104_s5 }
  0x49   :  { %p861_p6 = pnand %p859_p5, %p856_p4 }
  0x4b   :  { %864 = shalt.err (!%p861_p6)
}
  0x4c   :  { %s865_s2 = scalar_lea.vmem %s71_s28, 1024  ;;  %p870_p8 = scmp.lt.s32.totalorder %s71_s28, %s71_s28 }
  0x4d   :  { %p866_p7 = scmp.ne.s32.totalorder %s71_s28, %s865_s2  ;;  %p871_p9 = scmp.lt.s32.totalorder %s865_s2, %s865_s2 }
  0x4f   :  { %p872_p10 = por %p871_p9, %p870_p8 }
  0x51   :  { %p873_p11 = pnand %p872_p10, %p866_p7 }
  0x53   :  { %876 = shalt.err (!%p873_p11)
}
  0x54   :  { %76 = dma.hbm_to_vmem [thread:$0]  %s1104_s5, 1024, %s71_s28, [#allocation10], %s924_s10, %s924_s10, %s925_s12  }
  0x55   :  { %s877_s29 = scalar_lea.vmem %s88_s19, 16  ;;  %p882_p13 = scmp.lt.s32.totalorder %s88_s19, %s88_s19 }
  0x56   :  { %p878_p12 = scmp.ne.s32.totalorder %s88_s19, %s877_s29  ;;  %p883_p0 = scmp.lt.s32.totalorder %s877_s29, %s877_s29 }
  0x58   :  { %p884_p1 = por %p883_p0, %p882_p13 }
  0x5a   :  { %p885_p2 = pnand %p884_p1, %p878_p12 }
  0x5c   :  { %888 = shalt.err (!%p885_p2)
}
  0x5d   :  { %s928_s30 = smov [#allocation12]  }
  0x5e   :  { %90 = dma.vmem_to_smem %s88_s19, 16, %s928_s30, [#allocation5]  }
  0x5f   :  { %911 = dma.done.wait [#allocation3], 128  }
  0x60   :  { %912 = vsyncadd [#allocation3], 4294967168 }
  0x61   :  { %913 = dma.done.wait [#allocation7], 896  }
  0x62   :  { %914 = vsyncadd [#allocation7], 4294966400 }
  0x63   :  { %915 = dma.done.wait [#allocation10], 1280  }
  0x64   :  { %916 = vsyncadd [#allocation10], 4294966016 }
  0x65   :  { %917 = dma.done.wait [#allocation5], 16  }
  0x66   :  { %918 = vsyncadd [#allocation5], 4294967280 }
  0x67   :  { %109 = sfence }
  0x68   :  { %v112_v0 = vld [vmem:[#allocation8] sm:$0xff]  ;;  %v113_v1 = vld [vmem:[#allocation8 + $0x8] sm:$0xff]  ;;  %v115_v2 = vld [vmem:[#allocation9] sm:$0xff]  ;;  %v929_v3 = vmov 0.0|0.0   ;;  %v930_v5 = vmov 0.0   ;;  %vm116_vm0 = vcmask 64512   ;;  %v617_v58 = vlaneseq }
  0x69   :  { %737 = vmatprep.subr.bf16.mxu1 %v929_v3  ;;  %v738_v4 = vpack.c.bf16 %v113_v1, %v112_v0  ;;  %687 = vmatprep.subr.mxu0 %v930_v5  ;;  %v111_v6 = vld [vmem:[#allocation6] sm:$0xff]  ;;  %vm931_vm1 = vmmov 0   ;;  %v114_v7 = vld [vmem:[#allocation8 + $0x10] sm:$0xff]  ;;  %vm190_vm2 = vcmask 195584   ;;  %v271_v9 = vld [vmem:[#allocation11] sm:$0xff]  ;;  %vm280_vm3 = vcmask 261120  }
  0x6a   :  { %688 = vmatpush3.msra.mxu0 %v115_v2  ;;  %689 = vmatprep.mubr.msk.f32.mxu0 %vm931_vm1, %v930_v5  ;;  %v110_v8 = vld [vmem:[#allocation2] sm:$0xff]  ;;  %v272_v10 = vld [vmem:[#allocation11 + $0x8] sm:$0xff]  ;;  %v274_v13 = vld [vmem:[#allocation11 + $0x18] sm:$0xff]  ;;  %s664_s17 = sld [smem:[#allocation12 + $0x1]]  ;;  %v618_v59 = vand.u32 127, %v617_v58  ;;  %v620_v60 = vshrl.u32 %v617_v58, 7 }
  0x6b   :  { %739 = vmatpush3.bf16.msra.mxu1 %v738_v4  ;;  %690 = vmatmul.mubr.msk.f32.vlgmr.msra.gmra.mrb[0].mxu0 %vm116_vm0, %v111_v6  ;;  %v741_v11 = vpack.c.bf16 %v272_v10, %v271_v9  ;;  %v273_v12 = vld [vmem:[#allocation11 + $0x10] sm:$0xff]  ;;  %v372_v15 = vld [vmem:[#allocation9 + $0x8] sm:$0xff]  ;;  %v369_v23 = vld [vmem:[#allocation8 + $0x20] sm:$0xff]  ;;  %vm630_vm4 = vcmask 1040384   ;;  %vm632_vm5 = vcmask 58368  }
  0x6c   :  { %696 = vmatprep.subr.mxu1 %v930_v5  ;;  %698 = vmatprep.mubr.msk.f32.mxu1 %vm931_vm1, %v930_v5  ;;  %v744_v14 = vpack.c.bf16 %v274_v13, %v273_v12  ;;  %v654_v19 = vld [vmem:[%s1103_s4] ss:$0 sm:$0xff]  ;;  %v368_v22 = vld [vmem:[#allocation8 + $0x18] sm:$0xff]  ;;  %v370_v27 = vld [vmem:[#allocation8 + $0x28] sm:$0xff]  ;;  %v621_v0 = vsub.s32 %v618_v59, %v620_v60 }
  0x6d   :  { %740 = vmatprep.subr.bf16.mxu0 %v929_v3  ;;  %709 = vmatprep.mubr.msk.f32.mxu0 %vm931_vm1, %v930_v5  ;;  %v747_v25 = vpack.c.bf16 %v369_v23, %v368_v22  ;;  %v521_v29 = vld [vmem:[#allocation11 + $0x20] sm:$0xff]  ;;  %v522_v30 = vld [vmem:[#allocation11 + $0x28] sm:$0xff]  ;;  %v523_v33 = vld [vmem:[#allocation11 + $0x30] sm:$0xff] }
  0x6e   :  { %742 = vmatpush3.bf16.msra.mxu0 %v741_v11  ;;  %v750_v31 = vpack.c.bf16 %v522_v30, %v521_v29  ;;  %v524_v34 = vld [vmem:[#allocation11 + $0x38] sm:$0xff]  ;;  %v655_v36 = vld [vmem:[%s1105_s6] ss:$0 sm:$0xff]  ;;  %v660_v44 = vld [vmem:[%s1103_s4 + $0x1] ss:$0 sm:$0xff]  ;;  %s364_s4 = sld [smem:[#allocation12]] }
  0x6f   :  { %697 = vmatpush3.msra.mxu1 %v114_v7  ;;  %743 = vmatprep.subr.bf16.mxu0 %v929_v3  ;;  %v753_v35 = vpack.c.bf16 %v524_v34, %v523_v33  ;;  %v657_v40 = vld [vmem:[%s1106_s7] ss:$0 sm:$0xff]  ;;  %v661_v50 = vld [vmem:[%s1105_s6 + $0x1] ss:$0 sm:$0xff]  ;;  %s932_s6 = smov [#allocation13]  }
  0x70   :  { %699 = vmatmul.mubr.msk.f32.vlgmr.msra.gmra.mrb[0].mxu1 %vm190_vm2, %v110_v8  ;;  %712 = vmatprep.subr.mxu1 %v930_v5  ;;  %v663_v54 = vld [vmem:[%s1106_s7 + $0x1] ss:$0 sm:$0xff]  ;;  %v614_v63 = vstv %s664_s17  ;;  %s640_s18 = sshll.u32 %s932_s6, 4  ;;  %s641_s18 = int_to_ptr.vmem [resolvable:$true] %s640_s18 }
  0x71   :  { %714 = vmatprep.mubr.msk.f32.mxu1 %vm931_vm1, %v930_v5  ;;  %713 = vmatpush3.msra.mxu1 %v372_v15  ;;  %s889_s7 = scalar_lea.vmem %s641_s18, 32  ;;  %p894_p4 = scmp.lt.s32.totalorder %s641_s18, %s641_s18 }
  0x72   :  { %745 = vmatpush3.bf16.msra.mxu0 %v744_v14  ;;  %749 = vmatprep.subr.bf16.mxu1 %v929_v3  ;;  %p890_p3 = scmp.ne.s32.totalorder %s641_s18, %s889_s7  ;;  %p895_p5 = scmp.lt.s32.totalorder %s889_s7, %s889_s7 }
  0x73   :  { %746 = vmatprep.subr.bf16.mxu0 %v929_v3 }
  0x74   :  { %715 = vmatmul.mubr.msk.f32.vlgmr.msra.gmra.mrb[2].mxu1 %vm116_vm0, %v111_v6  ;;  %v365_v61 = vstv %s364_s4  ;;  %p896_p6 = por %p895_p5, %p894_p4 }
  0x75   :  { %734 = vmatprep.mubr.msk.f32.mxu1 %vm931_vm1, %v930_v5  ;;  %751 = vmatpush3.bf16.msra.mxu1 %v750_v31 }
  0x76   :  { %752 = vmatprep.subr.bf16.mxu1 %v929_v3  ;;  %p897_p7 = pnand %p896_p6, %p890_p3 }
  0x79   :  { %754 = vmatpush3.bf16.msra.mxu1 %v753_v35 }
 0x13e   :  { %v186_v16 = vpop.f32.mrb[0].mxu0 }
 0x13f   :  { %v691_v17 = vpop.f32.mrb[1].mxu0 }
 0x143   :  { %v260_v18 = vpop.f32.mrb[0].mxu1 }
 0x144   :  { %v261_v20 = vadd.f32 %v260_v18, %v186_v16  ;;  %v700_v21 = vpop.f32.mrb[1].mxu1 }
 0x146   :  { %v269_v24 = vadd.f32 %v654_v19, %v261_v20 }
 0x147   :  { %v439_v28 = vpop.f32.mrb[2].mxu1 }
 0x148   :  { %v270_v26 = vmax.f32 %v269_v24, 0.0  ;;  %v716_v32 = vpop.f32.mrb[3].mxu1 }
 0x14a   :  { %710 = vmatmul.mubr.msk.f32.vlgmr.msra.gmra.mrb[2].mxu0 %vm280_vm3, %v270_v26 }
 0x14b   :  { %748 = vmatpush3.bf16.msra.mxu0 %v747_v25  ;;  %723 = vmatprep.mubr.msk.f32.mxu0 %vm931_vm1, %v930_v5 }
 0x14c   :  { %721 = vmatprep.subr.mxu0 %v930_v5 }
 0x14f   :  { %722 = vmatpush3.msra.mxu0 %v370_v27 }
 0x150   :  { %724 = vmatmul.mubr.msk.f32.vlgmr.msra.gmra.mrb[4].mxu0 %vm190_vm2, %v110_v8 }
 0x21d   :  { %v350_v37 = vpop.f32.mrb[2].mxu0 }
 0x21e   :  { %v351_v38 = vadd.f32 %v655_v36, %v350_v37  ;;  %v711_v39 = vpop.f32.mrb[3].mxu0 }
 0x220   :  { %v354_v41 = vmax.f32 %v351_v38, 0.0 }
 0x222   :  { %v360_v42 = vmul.f32 %v657_v40, %v354_v41 }
 0x223   :  { %v509_v43 = vpop.f32.mrb[4].mxu0 }
 0x224   :  { %v510_v45 = vadd.f32 %v509_v43, %v439_v28  ;;  %v725_v46 = vpop.f32.mrb[5].mxu0  ;;  %v361_v47 = vsel %vm280_vm3, %v360_v42, 0.0 }
 0x225   :  { %362 = vadd.xlane.f32.xlu0 %v361_v47 }
 0x226   :  { %v518_v48 = vadd.f32 %v660_v44, %v510_v45 }
 0x228   :  { %v519_v49 = vmax.f32 %v518_v48, 0.0 }
 0x22a   :  { %735 = vmatmul.mubr.msk.f32.vlgmr.msra.gmra.mrb[4].mxu1 %vm280_vm3, %v519_v49 }
 0x2b2   :  { %v363_v62 = vpop.xlane.xlu0 %362 }
 0x2b3   :  { %v366_v1 = vadd.f32 %v365_v61, %v363_v62 }
 0x2b5   :  { %v622_v4 = vrot.slane %v366_v1, %v621_v0 }
 0x2fd   :  { %v599_v51 = vpop.f32.mrb[4].mxu1 }
 0x2fe   :  { %v600_v52 = vadd.f32 %v661_v50, %v599_v51  ;;  %v736_v53 = vpop.f32.mrb[5].mxu1 }
 0x300   :  { %v603_v55 = vmax.f32 %v600_v52, 0.0 }
 0x302   :  { %v609_v56 = vmul.f32 %v663_v54, %v603_v55 }
 0x304   :  { %v610_v57 = vsel %vm280_vm3, %v609_v56, 0.0 }
 0x305   :  { %611 = vadd.xlane.f32.xlu0 %v610_v57 }
 0x392   :  { %v612_v2 = vpop.xlane.xlu0 %611 }
 0x393   :  { %v615_v3 = vadd.f32 %v614_v63, %v612_v2 }
 0x395   :  { %v628_v5 = vrot.slane %v615_v3, %v621_v0 }
 0x397   :  { %v631_v6 = vsel %vm630_vm4, %v622_v4, %v628_v5 }
 0x398   :  { %633 = vst.msk [vmem:[#allocation13] sm:$0x3] %vm632_vm5, %v631_v6 }
 0x399   :  { %900 = shalt.err (!%p897_p7)
}
 0x39a   :  { %s901_s21 = scalar_lea.hbm %s1108_s9, 32 }
 0x39b   :  { %p902_p8 = scmp.ne.s32.totalorder %s1108_s9, %s901_s21  ;;  %p905_p9 = scmp.lt.u32.totalorder %s901_s21, %s1108_s9 }
 0x39d   :  { %p907_p10 = pnand %p905_p9, %p902_p8 }
 0x39f   :  { %910 = shalt.err (!%p907_p10)
}
 0x3a0   :  { %643 = dma.vmem_to_hbm [thread:$0]  %s641_s18, 32, %s1108_s9, [#allocation4]  }
 0x3a1   :  { %919 = dma.done.wait [#allocation4], 32  }
 0x3a2   :  { %920 = vsyncadd [#allocation4], 4294967264 }
 0x3a3   :  { %647 = vsyncpa [#allocation3], 1 }
 0x3a4   :  { %648 = vsyncpa [#allocation7], 1 }
 0x3a5   :  { %649 = vsyncpa [#allocation10], 1 }
 0x3a6   :  { %650 = vsyncpa [#allocation4], 1 }
 0x3a7   :  { %651 = vsyncpa [#allocation5], 1 }

</bundles_post_ra>
